<compile_context>
chip_gen: v7x
topology: tpu7x:2x2x1
jax: 0.10.0
libtpu: 0.0.40
codegen_flags: <defaults>
</compile_context>

<pallas_src>
import functools

import jax
import jax.numpy as jnp
from jax.experimental import pallas as pl
from jax.experimental.pallas import tpu as pltpu

LANES = 128
MAX_TILE_ROWS = 2048  # (2048, 128) f32 block = 1 MiB per input


def _wmse_kernel(p_ref, t_ref, w_ref, out_ref, acc_ref, *,
                 n_elems, tile_rows, needs_mask):
    """Accumulate sum(w * (p - t)^2) into a VMEM vector; finalize with /N."""
    i = pl.program_id(0)
    last = pl.num_programs(0) - 1

    @pl.when(i == 0)
    def _init():
        acc_ref[...] = jnp.zeros_like(acc_ref)

    p = p_ref[...].astype(jnp.float32)
    t = t_ref[...].astype(jnp.float32)
    w = w_ref[...].astype(jnp.float32)
    d = p - t
    prod = w * (d * d)  # (tile_rows, LANES)

    def _accumulate(block):
        # Fold the (tile_rows, 128) block onto the resident (8, 128)
        # accumulator.  The reshape groups whole (8, 128) layout tiles, so the
        # reduce over axis 0 is a chain of plain vreg adds (pure VALU).
        acc_ref[...] += jnp.sum(block.reshape(tile_rows // 8, 8, LANES), axis=0)

    if needs_mask:
        # Only the final grid step can touch lane-padding or rows that fall
        # past the true element count; interior steps skip the masking cost.
        @pl.when(i != last)
        def _body():
            _accumulate(prod)

        @pl.when(i == last)
        def _tail():
            row = jax.lax.broadcasted_iota(jnp.int32, (tile_rows, LANES), 0)
            lane = jax.lax.broadcasted_iota(jnp.int32, (tile_rows, LANES), 1)
            gidx = (i * tile_rows + row) * LANES + lane
            # jnp.where is a select, so any garbage (even NaN/Inf) read from
            # out-of-bounds rows is dropped.
            _accumulate(jnp.where(gidx < n_elems, prod, jnp.float32(0.0)))
    else:
        _accumulate(prod)

    @pl.when(i == last)
    def _finalize():
        out_ref[0, 0] = jnp.sum(acc_ref[...]) / jnp.float32(n_elems)


def weighted_euclidean_loss(predictions, targets, weights, *,
                            max_tile_rows=MAX_TILE_ROWS):
    """Pallas implementation of (weights * (predictions - targets)**2).mean()."""
    assert predictions.shape == targets.shape == weights.shape
    n_elems = int(predictions.size)
    assert n_elems > 0

    # Pad only the last partial 128-lane row (if any) so we can reshape to
    # (rows, 128).  The pad values are irrelevant: the kernel masks them out.
    lane_pad = (-n_elems) % LANES

    def prep(x):
        x = jnp.ravel(x)
        if lane_pad:
            x = jnp.pad(x, (0, lane_pad))
        return x.reshape(-1, LANES)

    p2 = prep(predictions)
    t2 = prep(targets)
    w2 = prep(weights)

    rows = p2.shape[0]
    # Tile rows: as large as possible (up to max_tile_rows), multiple of 8,
    # but no bigger than needed for small inputs.
    tile_rows = min(max_tile_rows, ((rows + 7) // 8) * 8)
    grid_size = pl.cdiv(rows, tile_rows)
    # Masking is only required when the padded grid footprint exceeds n_elems.
    needs_mask = (grid_size * tile_rows * LANES) != n_elems

    kernel = functools.partial(
        _wmse_kernel,
        n_elems=n_elems,
        tile_rows=tile_rows,
        needs_mask=needs_mask,
    )

    tile_spec = pl.BlockSpec((tile_rows, LANES), lambda i: (i, 0))

    out = pl.pallas_call(
        kernel,
        out_shape=jax.ShapeDtypeStruct((1, 1), jnp.float32),
        grid_spec=pltpu.PrefetchScalarGridSpec(
            num_scalar_prefetch=0,
            grid=(grid_size,),
            in_specs=[tile_spec, tile_spec, tile_spec],
            out_specs=pl.BlockSpec(
                (1, 1), lambda i: (0, 0), memory_space=pltpu.SMEM),
            scratch_shapes=[pltpu.VMEM((8, LANES), jnp.float32)],
        ),
        compiler_params=pltpu.CompilerParams(
            dimension_semantics=("arbitrary",)),
    )(p2, t2, w2)

    return out[0, 0]


if __name__ == "__main__":
    base_key = jax.random.PRNGKey(0)

    def check(shape, tag, **kw):
        kp, kt, kw_ = jax.random.split(jax.random.fold_in(base_key, tag), 3)
        p = jax.random.normal(kp, shape, dtype=jnp.float32)
        t = jax.random.normal(kt, shape, dtype=jnp.float32)
        w = jax.random.uniform(kw_, shape, dtype=jnp.float32)
        got = jax.block_until_ready(weighted_euclidean_loss(p, t, w, **kw))
        ref = jnp.mean(w * (p - t) ** 2)
        assert jnp.allclose(got, ref, rtol=1e-5, atol=1e-6), (shape, got, ref)

    # Primary NCHW-shaped example consistent with a dist-transform regression
    # net (single grid step, no tail mask needed).
    check((2, 4, 16, 16), tag=0)
    # Ragged (non-multiple-of-128) size -> exercises the in-kernel tail mask.
    check((3, 5, 7, 11), tag=1)
    # Force multi-step grids (tiny tile_rows) -> exercises the resident
    # accumulator plus the unmasked-interior / masked-last-step split.
    check((2, 4, 16, 16), tag=2, max_tile_rows=8)
    check((3, 5, 7, 11), tag=3, max_tile_rows=8)

    print("KERNEL_OK")
</pallas_src>

<mosaic_0001>
module attributes {stable_mosaic.version = 11 : i64} {
  func.func @_wmse_kernel(%arg0: i32, %arg1: memref<16x128xf32, #tpu.memory_space<vmem>>, %arg2: memref<16x128xf32, #tpu.memory_space<vmem>>, %arg3: memref<16x128xf32, #tpu.memory_space<vmem>>, %arg4: memref<1x1xf32, #tpu.memory_space<smem>>, %arg5: memref<8x128xf32, #tpu.memory_space<vmem>>) attributes {dimension_semantics = [#tpu.dimension_semantics<arbitrary>], iteration_bounds = array<i64: 1>, scalar_prefetch = 0 : i64, scratch_operands = 1 : i64, tpu.core_type = #tpu.core_type<tc>, window_params = [{transform_indices = @transform_0, window_bounds = array<i64: 16, 128>}, {transform_indices = @transform_1, window_bounds = array<i64: 16, 128>}, {transform_indices = @transform_2, window_bounds = array<i64: 16, 128>}, {transform_indices = @transform_3, window_bounds = array<i64: 1, 1>}]} {
    %c0_i32 = arith.constant 0 : i32
    %0 = arith.cmpi eq, %arg0, %c0_i32 : i32
    %1 = arith.extui %0 : i1 to i32
    %c0_i32_0 = arith.constant 0 : i32
    %2 = arith.cmpi ne, %1, %c0_i32_0 : i32
    scf.if %2 {
      %cst_12 = arith.constant 0.000000e+00 : f32
      %17 = vector.broadcast %cst_12 : f32 to vector<8x128xf32>
      %c0_13 = arith.constant 0 : index
      %c0_14 = arith.constant 0 : index
      %18 = vector.load %arg5[%c0_13, %c0_14] : memref<8x128xf32, #tpu.memory_space<vmem>>, vector<8x128xf32>
      tpu.vector_store %arg5[%c0_13, %c0_14], %17 {strides = array<i32>} : memref<8x128xf32, #tpu.memory_space<vmem>>, vector<8x128xf32>,
    } else {
    }
    %c0 = arith.constant 0 : index
    %c0_1 = arith.constant 0 : index
    %3 = vector.load %arg1[%c0, %c0_1] : memref<16x128xf32, #tpu.memory_space<vmem>>, vector<16x128xf32>
    %c0_2 = arith.constant 0 : index
    %c0_3 = arith.constant 0 : index
    %4 = vector.load %arg2[%c0_2, %c0_3] : memref<16x128xf32, #tpu.memory_space<vmem>>, vector<16x128xf32>
    %c0_4 = arith.constant 0 : index
    %c0_5 = arith.constant 0 : index
    %5 = vector.load %arg3[%c0_4, %c0_5] : memref<16x128xf32, #tpu.memory_space<vmem>>, vector<16x128xf32>
    %6 = arith.subf %3, %4 : vector<16x128xf32>
    %7 = arith.mulf %6, %6 : vector<16x128xf32>
    %8 = arith.mulf %5, %7 : vector<16x128xf32>
    %c0_6 = arith.constant 0 : index
    %c0_7 = arith.constant 0 : index
    %9 = vector.load %arg5[%c0_6, %c0_7] : memref<8x128xf32, #tpu.memory_space<vmem>>, vector<8x128xf32>
    %10 = vector.shape_cast %8 : vector<16x128xf32> to vector<2x8x128xf32>
    %cst = arith.constant dense<0.000000e+00> : vector<8x128xf32>
    %11 = vector.multi_reduction <add>, %10, %cst [0] : vector<2x8x128xf32> to vector<8x128xf32>
    %12 = arith.addf %9, %11 : vector<8x128xf32>
    %c0_8 = arith.constant 0 : index
    %c0_9 = arith.constant 0 : index
    %13 = vector.load %arg5[%c0_8, %c0_9] : memref<8x128xf32, #tpu.memory_space<vmem>>, vector<8x128xf32>
    tpu.vector_store %arg5[%c0_8, %c0_9], %12 {strides = array<i32>} : memref<8x128xf32, #tpu.memory_space<vmem>>, vector<8x128xf32>,
    %c0_i32_10 = arith.constant 0 : i32
    %14 = arith.cmpi eq, %arg0, %c0_i32_10 : i32
    %15 = arith.extui %14 : i1 to i32
    %c0_i32_11 = arith.constant 0 : i32
    %16 = arith.cmpi ne, %15, %c0_i32_11 : i32
    scf.if %16 {
      %c0_12 = arith.constant 0 : index
      %c0_13 = arith.constant 0 : index
      %17 = vector.load %arg5[%c0_12, %c0_13] : memref<8x128xf32, #tpu.memory_space<vmem>>, vector<8x128xf32>
      %18 = vector.shape_cast %17 : vector<8x128xf32> to vector<1x8x128xf32>
      %cst_14 = arith.constant dense<0.000000e+00> : vector<1xf32>
      %19 = vector.multi_reduction <add>, %18, %cst_14 [1, 2] : vector<1x8x128xf32> to vector<1xf32>
      %20 = vector.shape_cast %19 : vector<1xf32> to vector<1x1x1xf32>
      %21 = vector.extract %20[0, 0, 0] : f32 from vector<1x1x1xf32>
      %cst_15 = arith.constant 2.048000e+03 : f32
      %22 = arith.divf %21, %cst_15 : f32
      %c0_16 = arith.constant 0 : index
      %c0_17 = arith.constant 0 : index
      %23 = memref.load %arg4[%c0_16, %c0_17] : memref<1x1xf32, #tpu.memory_space<smem>>
      memref.store %22, %arg4[%c0_16, %c0_17] : memref<1x1xf32, #tpu.memory_space<smem>>
    } else {
    }
    return
  }
  func.func @transform_0(%arg0: i32) -> (i32, i32) {
    %c0_i32 = arith.constant 0 : i32
    %c0_i32_0 = arith.constant 0 : i32
    return %arg0, %c0_i32 : i32, i32
  }
  func.func @transform_1(%arg0: i32) -> (i32, i32) {
    %c0_i32 = arith.constant 0 : i32
    %c0_i32_0 = arith.constant 0 : i32
    return %arg0, %c0_i32 : i32, i32
  }
  func.func @transform_2(%arg0: i32) -> (i32, i32) {
    %c0_i32 = arith.constant 0 : i32
    %c0_i32_0 = arith.constant 0 : i32
    return %arg0, %c0_i32 : i32, i32
  }
  func.func @transform_3(%arg0: i32) -> (i32, i32) {
    %c0_i32 = arith.constant 0 : i32
    %c0_i32_0 = arith.constant 0 : i32
    %c0_i32_1 = arith.constant 0 : i32
    return %c0_i32, %c0_i32_0 : i32, i32
  }
}

</mosaic_0001>

<bundles_post_ra>
// kernel: tpu_custom_call.1
= control target key start
LH: loop header
LB: loop body
LE: loop exit
PB: predicated region body
PF: predicated region fallthrough
CT: control target
= control target key end

     0   :  { %8 = vsyncpa [#allocation4], 0  ;;  %s290_s0 = inlined_call_operand.hbm [shape: f32[16,128], index: 0, kind: input, shape index: {}]   ;;  %s291_s1 = inlined_call_operand.hbm [shape: f32[16,128], index: 1, kind: input, shape index: {}]   ;;  %s292_s2 = inlined_call_operand.hbm [shape: f32[16,128], index: 2, kind: input, shape index: {}]   ;;  %s293_s3 = inlined_call_operand.hbm [shape: f32[1,1], index: 3, kind: output, shape index: {}]  }
   0x1   :  { %9 = vsyncpa [#allocation7], 0 }
   0x2   :  { %10 = vsyncpa [#allocation5], 0  ;;  %s200_s12 = smov [#allocation6]   ;;  %s201_s14 = smov [#allocation3]  }
   0x3   :  { %s28_s13 = sshll.u32 %s200_s12, 4  ;;  %s16_s15 = sshll.u32 %s201_s14, 4  ;;  %s29_s13 = int_to_ptr.vmem [resolvable:$true] %s28_s13  ;;  %s226_s15 = int_to_ptr.vmem [resolvable:$true] %s16_s15 }
   0x4   :  { %s118_s18 = scalar_lea.hbm %s291_s1, 256 }
   0x5   :  { %p119_p0 = scmp.ne.s32.totalorder %s291_s1, %s118_s18  ;;  %p122_p1 = scmp.lt.u32.totalorder %s118_s18, %s291_s1 }
   0x7   :  { %p124_p2 = pnand %p122_p1, %p119_p0 }
   0x9   :  { %127 = shalt.err (!%p124_p2)
}
   0xa   :  { %s128_s23 = scalar_lea.vmem %s29_s13, 256  ;;  %p133_p4 = scmp.lt.s32.totalorder %s29_s13, %s29_s13 }
   0xb   :  { %p129_p3 = scmp.ne.s32.totalorder %s29_s13, %s128_s23  ;;  %p134_p5 = scmp.lt.s32.totalorder %s128_s23, %s128_s23 }
   0xd   :  { %p135_p6 = por %p134_p5, %p133_p4 }
   0xf   :  { %p136_p7 = pnand %p135_p6, %p129_p3 }
  0x11   :  { %139 = shalt.err (!%p136_p7)
}
  0x12   :  { %s202_s24 = smov 128   ;;  %s203_s25 = smov 8  }
  0x13   :  { %34 = dma.hbm_to_vmem [thread:$0]  %s291_s1, 256, %s29_s13, [#allocation7], %s202_s24, %s202_s24, %s203_s25  }
  0x14   :  { %s140_s30 = scalar_lea.hbm %s290_s0, 256 }
  0x15   :  { %p141_p8 = scmp.ne.s32.totalorder %s290_s0, %s140_s30  ;;  %p144_p9 = scmp.lt.u32.totalorder %s140_s30, %s290_s0 }
  0x17   :  { %p146_p10 = pnand %p144_p9, %p141_p8 }
  0x19   :  { %149 = shalt.err (!%p146_p10)
}
  0x1a   :  { %s150_s8 = scalar_lea.vmem %s226_s15, 256  ;;  %p155_p12 = scmp.lt.s32.totalorder %s226_s15, %s226_s15 }
  0x1b   :  { %p151_p11 = scmp.ne.s32.totalorder %s226_s15, %s150_s8  ;;  %p156_p13 = scmp.lt.s32.totalorder %s150_s8, %s150_s8 }
  0x1d   :  { %p157_p0 = por %p156_p13, %p155_p12 }
  0x1f   :  { %p158_p1 = pnand %p157_p0, %p151_p11 }
  0x21   :  { %161 = shalt.err (!%p158_p1)
}
  0x22   :  { %22 = dma.hbm_to_vmem [thread:$0]  %s290_s0, 256, %s226_s15, [#allocation4], %s202_s24, %s202_s24, %s203_s25  }
  0x23   :  { %s204_s10 = smov [#allocation8]   ;;  %s162_s14 = scalar_lea.hbm %s292_s2, 256 }
  0x24   :  { %s40_s11 = sshll.u32 %s204_s10, 4  ;;  %p163_p2 = scmp.ne.s32.totalorder %s292_s2, %s162_s14  ;;  %s41_s11 = int_to_ptr.vmem [resolvable:$true] %s40_s11 }
  0x25   :  { %p166_p3 = scmp.lt.u32.totalorder %s162_s14, %s292_s2 }
  0x27   :  { %p168_p4 = pnand %p166_p3, %p163_p2 }
  0x29   :  { %171 = shalt.err (!%p168_p4)
}
  0x2a   :  { %s172_s20 = scalar_lea.vmem %s41_s11, 256  ;;  %p177_p6 = scmp.lt.s32.totalorder %s41_s11, %s41_s11 }
  0x2b   :  { %p173_p5 = scmp.ne.s32.totalorder %s41_s11, %s172_s20  ;;  %p178_p7 = scmp.lt.s32.totalorder %s172_s20, %s172_s20 }
  0x2d   :  { %p179_p8 = por %p178_p7, %p177_p6 }
  0x2f   :  { %p180_p9 = pnand %p179_p8, %p173_p5 }
  0x31   :  { %183 = shalt.err (!%p180_p9)
}
  0x32   :  { %46 = dma.hbm_to_vmem [thread:$0]  %s292_s2, 256, %s41_s11, [#allocation7], %s202_s24, %s202_s24, %s203_s25  }
  0x33   :  { %194 = dma.done.wait [#allocation4], 256  }
  0x34   :  { %195 = vsyncadd [#allocation4], 4294967040 }
  0x35   :  { %196 = dma.done.wait [#allocation7], 512  }
  0x36   :  { %197 = vsyncadd [#allocation7], 4294966784  ;;  %v61_v0 = vld [vmem:[#allocation3] sm:$0xff]  ;;  %v62_v1 = vld [vmem:[#allocation3 + $0x8] sm:$0xff]  ;;  %s184_s24 = scalar_lea.hbm %s293_s3, 16 }
  0x37   :  { %v63_v2 = vld [vmem:[#allocation6] sm:$0xff]  ;;  %v64_v3 = vld [vmem:[#allocation6 + $0x8] sm:$0xff]  ;;  %v65_v5 = vld [vmem:[#allocation8] sm:$0xff]  ;;  %p185_p10 = scmp.ne.s32.totalorder %s293_s3, %s184_s24  ;;  %p188_p11 = scmp.lt.u32.totalorder %s184_s24, %s293_s3 }
  0x38   :  { %v67_v4 = vsub.f32 %v61_v0, %v63_v2  ;;  %v68_v6 = vsub.f32 %v62_v1, %v64_v3  ;;  %v66_v7 = vld [vmem:[#allocation8 + $0x8] sm:$0xff] }
  0x39   :  { %p190_p12 = pnand %p188_p11, %p185_p10 }
  0x3a   :  { %v69_v8 = vmul.f32 %v67_v4, %v67_v4  ;;  %v70_v9 = vmul.f32 %v68_v6, %v68_v6 }
  0x3c   :  { %v71_v10 = vmul.f32 %v69_v8, %v65_v5  ;;  %v72_v11 = vmul.f32 %v70_v9, %v66_v7 }
  0x3e   :  { %v74_v12 = vadd.f32 %v72_v11, %v71_v10 }
  0x40   :  { %81 = vadd.xlane.f32.xlu0 %v74_v12 }
  0xcd   :  { %v82_v13 = vpop.xlane.xlu0 %81 }
  0xce   :  { %v83_v14 = vrot.slane %v82_v13, 4 }
  0xd0   :  { %v84_v15 = vadd.f32 %v83_v14, %v82_v13 }
  0xd2   :  { %v85_v16 = vrot.slane %v84_v15, 2 }
  0xd4   :  { %v86_v17 = vadd.f32 %v85_v16, %v84_v15 }
  0xd6   :  { %v87_v18 = vrot.slane %v86_v17, 1 }
  0xd8   :  { %v88_v19 = vadd.f32 %v87_v18, %v86_v17 }
  0xda   :  { %110 = vpush %v88_v19 }
 0x10b   :  { %s111_s2 = spop %110 }
 0x10c   :  { %s92_s21 = smul.f32 0.00048828125, %s111_s2 }
 0x10e   :  { %94 = sst [smem:[#allocation9]] %s92_s21 }
 0x10f   :  { %193 = shalt.err (!%p190_p12)
}
 0x110   :  { %s205_s29 = smov [#allocation9]  }
 0x111   :  { %102 = dma.smem_to_hbm %s205_s29, 16, %s293_s3, [#allocation5]  }
 0x112   :  { %198 = dma.done.wait [#allocation5], 16  }
 0x113   :  { %199 = vsyncadd [#allocation5], 4294967280 }
 0x114   :  { %106 = sfence }
 0x115   :  { %107 = vsyncpa [#allocation4], 1 }
 0x116   :  { %108 = vsyncpa [#allocation7], 1 }
 0x117   :  { %109 = vsyncpa [#allocation5], 1 }

</bundles_post_ra>
